<compile_context>
chip_gen: v5e
topology: v5e:2x2
jax: 0.10.0
libtpu: 0.0.40
codegen_flags: <defaults>
</compile_context>

<pallas_src>
import functools

import jax
import jax.numpy as jnp
from jax.experimental import pallas as pl
from jax.experimental.pallas import tpu as pltpu


def _round_up(x, m):
    return (x + m - 1) // m * m


def classblock_kernel(x_ref, wct_ref, gamma_ref, beta_ref, wlt_ref, bl_ref,
                      o_ref, acc_ref, *, n_real):
    # x_ref:     (N_pad, tk)      f32 activations (K tile)
    # wct_ref:   (tk, B_pad)      bf16 pre-transposed conv weight (K tile)
    # gamma_ref: (1, B_pad)       BN weight (f32)
    # beta_ref:  (1, B_pad)       BN bias   (f32)
    # wlt_ref:   (B_pad, C_pad)   bf16 pre-transposed classifier weight
    # bl_ref:    (1, C_pad)       classifier bias (f32)
    # o_ref:     (N_pad, C_pad)   f32 logits
    # acc_ref:   (N_pad, B_pad)   f32 conv accumulator (persists across grid)
    k = pl.program_id(0)

    @pl.when(k == 0)
    def _():
        acc_ref[...] = jnp.zeros_like(acc_ref)

    # 1x1 conv on 1x1 spatial == matmul over channels; bf16 MXU, f32 accum.
    acc_ref[...] += jnp.dot(
        x_ref[...].astype(jnp.bfloat16), wct_ref[...],
        preferred_element_type=jnp.float32)

    @pl.when(k == pl.num_programs(0) - 1)
    def _():
        h = acc_ref[...]                                     # (N_pad, B_pad) f32
        inv_n = jnp.float32(1.0 / n_real)
        # Padded batch rows of x are zero, so they contribute nothing to the
        # sums; divide by the *real* batch size and mask them out of the
        # variance (two-pass form -> no cancellation).
        mu = jnp.sum(h, axis=0, keepdims=True) * inv_n       # (1, B_pad)
        row = jax.lax.broadcasted_iota(jnp.int32, h.shape, 0)
        mask = (row < n_real).astype(jnp.float32)
        d = (h - mu) * mask
        var = jnp.sum(d * d, axis=0, keepdims=True) * inv_n  # biased variance
        inv = jax.lax.rsqrt(var + jnp.float32(1e-5))
        # Fold BN into one scale/shift, fuse ReLU.
        scale = gamma_ref[...] * inv
        shift = beta_ref[...] - mu * scale
        hn = jnp.maximum(h * scale + shift, 0.0)
        # Classifier matmul (bf16 MXU, f32 accum) + bias.
        logits = jnp.dot(hn.astype(jnp.bfloat16), wlt_ref[...],
                         preferred_element_type=jnp.float32) + bl_ref[...]
        o_ref[...] = logits.astype(o_ref.dtype)


def class_block_forward(x_nchw, wc, gamma, beta, wl, bl, *, tk=512):
    """x_nchw: (N, C_in, 1, 1) f32.  Returns (N, class_num) f32 logits."""
    n, c_in, hh, ww = x_nchw.shape
    assert hh == 1 and ww == 1, "ClassBlock expects 1x1 spatial input"
    class_num, num_bottleneck = wl.shape

    # Padded, lane-dense / sublane-aligned sizes.
    n_pad = _round_up(n, 8)
    b_pad = _round_up(num_bottleneck, 128)
    c_pad = _round_up(class_num, 128)
    tk = _round_up(max(128, min(tk, _round_up(c_in, 128))), 128)
    k_pad = _round_up(c_in, tk)
    n_k = k_pad // tk

    # Zero-pad activations; pre-transpose + bf16-cast the weights once.
    x2d = x_nchw.reshape(n, c_in).astype(jnp.float32)
    x_p = jnp.zeros((n_pad, k_pad), jnp.float32).at[:n, :c_in].set(x2d)
    wct = (jnp.zeros((k_pad, b_pad), jnp.bfloat16)
           .at[:c_in, :num_bottleneck].set(wc.T.astype(jnp.bfloat16)))
    wlt = (jnp.zeros((b_pad, c_pad), jnp.bfloat16)
           .at[:num_bottleneck, :class_num].set(wl.T.astype(jnp.bfloat16)))
    gamma_p = jnp.ones((1, b_pad), jnp.float32).at[0, :num_bottleneck].set(gamma)
    beta_p = jnp.zeros((1, b_pad), jnp.float32).at[0, :num_bottleneck].set(beta)
    bl_p = jnp.zeros((1, c_pad), jnp.float32).at[0, :class_num].set(bl)

    out = pl.pallas_call(
        functools.partial(classblock_kernel, n_real=n),
        out_shape=jax.ShapeDtypeStruct((n_pad, c_pad), jnp.float32),
        grid_spec=pltpu.PrefetchScalarGridSpec(
            num_scalar_prefetch=0,
            grid=(n_k,),
            in_specs=[
                pl.BlockSpec((n_pad, tk), lambda k: (0, k)),      # x  (K tile)
                pl.BlockSpec((tk, b_pad), lambda k: (k, 0)),      # wc^T (K tile)
                pl.BlockSpec((1, b_pad), lambda k: (0, 0)),       # gamma
                pl.BlockSpec((1, b_pad), lambda k: (0, 0)),       # beta
                pl.BlockSpec((b_pad, c_pad), lambda k: (0, 0)),   # wl^T
                pl.BlockSpec((1, c_pad), lambda k: (0, 0)),       # bias
            ],
            out_specs=pl.BlockSpec((n_pad, c_pad), lambda k: (0, 0)),
            scratch_shapes=[pltpu.VMEM((n_pad, b_pad), jnp.float32)],
        ),
        compiler_params=pltpu.CompilerParams(
            dimension_semantics=("arbitrary",)),
    )(x_p, wct, gamma_p, beta_p, wlt, bl_p)

    # NOTE: PyTorch .squeeze() also drops the batch dim when N == 1; we keep
    # (N, class_num) for all N.
    return out[:n, :class_num]


def init_params(key, input_dim, num_bottleneck, class_num):
    k_conv, k_cls = jax.random.split(key, 2)
    # Conv2d kaiming_normal, mode='fan_out', relu: std = sqrt(2 / fan_out).
    conv_std = (2.0 / num_bottleneck) ** 0.5
    wc = conv_std * jax.random.normal(k_conv, (num_bottleneck, input_dim), jnp.float32)
    # BatchNorm2d: weight = 1, bias = 0 (weights_init_kaiming).
    gamma = jnp.ones((num_bottleneck,), jnp.float32)
    beta = jnp.zeros((num_bottleneck,), jnp.float32)
    # Linear classifier: normal std=0.001, bias 0 (weights_init_classifier).
    wl = 0.001 * jax.random.normal(k_cls, (class_num, num_bottleneck), jnp.float32)
    bl = jnp.zeros((class_num,), jnp.float32)
    return wc, gamma, beta, wl, bl


if __name__ == "__main__":
    # Small shapes consistent with the module (default num_bottleneck=256).
    batch, input_dim, num_bottleneck, class_num = 2, 256, 256, 8

    key = jax.random.PRNGKey(0)
    k_x, k_p = jax.random.split(key)
    x = jax.random.normal(k_x, (batch, input_dim, 1, 1), jnp.float32)
    wc, gamma, beta, wl, bl = init_params(k_p, input_dim, num_bottleneck, class_num)

    # tk=128 -> 2 K-tiles, exercising the pipelined accumulation path.
    out = class_block_forward(x, wc, gamma, beta, wl, bl, tk=128)
    jax.block_until_ready(out)

    # Pure-JAX reference with the same bf16-MXU / f32-accumulation numerics.
    def ref(x_nchw):
        x2d = x_nchw.reshape(batch, input_dim)
        h = jnp.dot(x2d.astype(jnp.bfloat16), wc.T.astype(jnp.bfloat16),
                    preferred_element_type=jnp.float32)
        mu = jnp.mean(h, axis=0, keepdims=True)
        var = jnp.mean((h - mu) ** 2, axis=0, keepdims=True)
        hn = (h - mu) * jax.lax.rsqrt(var + 1e-5) * gamma + beta
        hn = jnp.maximum(hn, 0.0)
        return jnp.dot(hn.astype(jnp.bfloat16), wl.T.astype(jnp.bfloat16),
                       preferred_element_type=jnp.float32) + bl

    expected = ref(x)
    assert out.shape == (batch, class_num)
    assert jnp.allclose(out, expected, atol=1e-4, rtol=1e-3), (
        float(jnp.max(jnp.abs(out - expected))))
    print("KERNEL_OK")
</pallas_src>

<mosaic_0001>
module attributes {stable_mosaic.version = 11 : i64} {
  func.func @classblock_kernel(%arg0: i32, %arg1: memref<8x128xf32, #tpu.memory_space<vmem>>, %arg2: memref<128x256xbf16, #tpu.memory_space<vmem>>, %arg3: memref<1x256xf32, #tpu.memory_space<vmem>>, %arg4: memref<1x256xf32, #tpu.memory_space<vmem>>, %arg5: memref<256x128xbf16, #tpu.memory_space<vmem>>, %arg6: memref<1x128xf32, #tpu.memory_space<vmem>>, %arg7: memref<8x128xf32, #tpu.memory_space<vmem>>, %arg8: memref<8x256xf32, #tpu.memory_space<vmem>>) attributes {dimension_semantics = [#tpu.dimension_semantics<arbitrary>], iteration_bounds = array<i64: 2>, scalar_prefetch = 0 : i64, scratch_operands = 1 : i64, tpu.core_type = #tpu.core_type<tc>, window_params = [{transform_indices = @transform_0, window_bounds = array<i64: 8, 128>}, {transform_indices = @transform_1, window_bounds = array<i64: 128, 256>}, {pipeline_mode = #tpu.pipeline_mode<synchronous>, transform_indices = @transform_2, window_bounds = array<i64: 1, 256>}, {pipeline_mode = #tpu.pipeline_mode<synchronous>, transform_indices = @transform_3, window_bounds = array<i64: 1, 256>}, {pipeline_mode = #tpu.pipeline_mode<synchronous>, transform_indices = @transform_4, window_bounds = array<i64: 256, 128>}, {pipeline_mode = #tpu.pipeline_mode<synchronous>, transform_indices = @transform_5, window_bounds = array<i64: 1, 128>}, {pipeline_mode = #tpu.pipeline_mode<synchronous>, transform_indices = @transform_6, window_bounds = array<i64: 8, 128>}]} {
    %c0_i32 = arith.constant 0 : i32
    %0 = arith.cmpi eq, %arg0, %c0_i32 : i32
    %1 = arith.extui %0 : i1 to i32
    %c0_i32_0 = arith.constant 0 : i32
    %2 = arith.cmpi ne, %1, %c0_i32_0 : i32
    scf.if %2 {
      %cst_9 = arith.constant 0.000000e+00 : f32
      %13 = vector.broadcast %cst_9 : f32 to vector<8x256xf32>
      %c0_10 = arith.constant 0 : index
      %c0_11 = arith.constant 0 : index
      %14 = vector.load %arg8[%c0_10, %c0_11] : memref<8x256xf32, #tpu.memory_space<vmem>>, vector<8x256xf32>
      tpu.vector_store %arg8[%c0_10, %c0_11], %13 {strides = array<i32>} : memref<8x256xf32, #tpu.memory_space<vmem>>, vector<8x256xf32>,
    } else {
    }
    %c0 = arith.constant 0 : index
    %c0_1 = arith.constant 0 : index
    %3 = vector.load %arg8[%c0, %c0_1] : memref<8x256xf32, #tpu.memory_space<vmem>>, vector<8x256xf32>
    %c0_2 = arith.constant 0 : index
    %c0_3 = arith.constant 0 : index
    %4 = vector.load %arg1[%c0_2, %c0_3] : memref<8x128xf32, #tpu.memory_space<vmem>>, vector<8x128xf32>
    %5 = arith.truncf %4 : vector<8x128xf32> to vector<8x128xbf16>
    %c0_4 = arith.constant 0 : index
    %c0_5 = arith.constant 0 : index
    %6 = vector.load %arg2[%c0_4, %c0_5] : memref<128x256xbf16, #tpu.memory_space<vmem>>, vector<128x256xbf16>
    %cst = arith.constant dense<0.000000e+00> : vector<8x256xf32>
    %7 = tpu.matmul %5, %6, %cst {dimension_numbers = #tpu.dot_dimension_numbers<[1], [0], [0], [1], [0, 0, 1, 1], [], []>} : vector<8x128xbf16>, vector<128x256xbf16>, vector<8x256xf32> -> vector<8x256xf32>
    %8 = arith.addf %3, %7 : vector<8x256xf32>
    %c0_6 = arith.constant 0 : index
    %c0_7 = arith.constant 0 : index
    %9 = vector.load %arg8[%c0_6, %c0_7] : memref<8x256xf32, #tpu.memory_space<vmem>>, vector<8x256xf32>
    tpu.vector_store %arg8[%c0_6, %c0_7], %8 {strides = array<i32>} : memref<8x256xf32, #tpu.memory_space<vmem>>, vector<8x256xf32>,
    %c1_i32 = arith.constant 1 : i32
    %10 = arith.cmpi eq, %arg0, %c1_i32 : i32
    %11 = arith.extui %10 : i1 to i32
    %c0_i32_8 = arith.constant 0 : i32
    %12 = arith.cmpi ne, %11, %c0_i32_8 : i32
    scf.if %12 {
      %c0_9 = arith.constant 0 : index
      %c0_10 = arith.constant 0 : index
      %13 = vector.load %arg8[%c0_9, %c0_10] : memref<8x256xf32, #tpu.memory_space<vmem>>, vector<8x256xf32>
      %cst_11 = arith.constant dense<0.000000e+00> : vector<256xf32>
      %14 = vector.multi_reduction <add>, %13, %cst_11 [0] : vector<8x256xf32> to vector<256xf32>
      %15 = vector.shape_cast %14 : vector<256xf32> to vector<1x256xf32>
      %cst_12 = arith.constant 5.000000e-01 : f32
      %16 = vector.broadcast %cst_12 : f32 to vector<1x256xf32>
      %17 = arith.mulf %15, %16 : vector<1x256xf32>
      %18 = tpu.iota {dimensions = array<i32: 0>} : vector<8x256xi32>
      %c2_i32 = arith.constant 2 : i32
      %19 = vector.broadcast %c2_i32 : i32 to vector<8x256xi32>
      %20 = arith.cmpi slt, %18, %19 : vector<8x256xi32>
      %21 = arith.extui %20 : vector<8x256xi1> to vector<8x256xi32>
      %22 = arith.sitofp %21 : vector<8x256xi32> to vector<8x256xf32>
      %23 = vector.broadcast %17 : vector<1x256xf32> to vector<8x256xf32>
      %24 = arith.subf %13, %23 : vector<8x256xf32>
      %25 = arith.mulf %24, %22 : vector<8x256xf32>
      %26 = arith.mulf %25, %25 : vector<8x256xf32>
      %cst_13 = arith.constant dense<0.000000e+00> : vector<256xf32>
      %27 = vector.multi_reduction <add>, %26, %cst_13 [0] : vector<8x256xf32> to vector<256xf32>
      %28 = vector.shape_cast %27 : vector<256xf32> to vector<1x256xf32>
      %cst_14 = arith.constant 5.000000e-01 : f32
      %29 = vector.broadcast %cst_14 : f32 to vector<1x256xf32>
      %30 = arith.mulf %28, %29 : vector<1x256xf32>
      %cst_15 = arith.constant 9.99999974E-6 : f32
      %31 = vector.broadcast %cst_15 : f32 to vector<1x256xf32>
      %32 = arith.addf %30, %31 : vector<1x256xf32>
      %33 = math.rsqrt %32 : vector<1x256xf32>
      %c0_16 = arith.constant 0 : index
      %c0_17 = arith.constant 0 : index
      %34 = vector.load %arg3[%c0_16, %c0_17] : memref<1x256xf32, #tpu.memory_space<vmem>>, vector<1x256xf32>
      %35 = arith.mulf %34, %33 : vector<1x256xf32>
      %c0_18 = arith.constant 0 : index
      %c0_19 = arith.constant 0 : index
      %36 = vector.load %arg4[%c0_18, %c0_19] : memref<1x256xf32, #tpu.memory_space<vmem>>, vector<1x256xf32>
      %37 = arith.mulf %17, %35 : vector<1x256xf32>
      %38 = arith.subf %36, %37 : vector<1x256xf32>
      %39 = vector.broadcast %35 : vector<1x256xf32> to vector<8x256xf32>
      %40 = arith.mulf %13, %39 : vector<8x256xf32>
      %41 = vector.broadcast %38 : vector<1x256xf32> to vector<8x256xf32>
      %42 = arith.addf %40, %41 : vector<8x256xf32>
      %cst_20 = arith.constant 0.000000e+00 : f32
      %43 = vector.broadcast %cst_20 : f32 to vector<8x256xf32>
      %44 = arith.maximumf %42, %43 : vector<8x256xf32>
      %45 = arith.truncf %44 : vector<8x256xf32> to vector<8x256xbf16>
      %c0_21 = arith.constant 0 : index
      %c0_22 = arith.constant 0 : index
      %46 = vector.load %arg5[%c0_21, %c0_22] : memref<256x128xbf16, #tpu.memory_space<vmem>>, vector<256x128xbf16>
      %cst_23 = arith.constant dense<0.000000e+00> : vector<8x128xf32>
      %47 = tpu.matmul %45, %46, %cst_23 {dimension_numbers = #tpu.dot_dimension_numbers<[1], [0], [0], [1], [0, 0, 1, 1], [], []>} : vector<8x256xbf16>, vector<256x128xbf16>, vector<8x128xf32> -> vector<8x128xf32>
      %c0_24 = arith.constant 0 : index
      %c0_25 = arith.constant 0 : index
      %48 = vector.load %arg6[%c0_24, %c0_25] : memref<1x128xf32, #tpu.memory_space<vmem>>, vector<1x128xf32>
      %49 = vector.broadcast %48 : vector<1x128xf32> to vector<8x128xf32>
      %50 = arith.addf %47, %49 : vector<8x128xf32>
      %c0_26 = arith.constant 0 : index
      %c0_27 = arith.constant 0 : index
      %51 = vector.load %arg7[%c0_26, %c0_27] : memref<8x128xf32, #tpu.memory_space<vmem>>, vector<8x128xf32>
      tpu.vector_store %arg7[%c0_26, %c0_27], %50 {strides = array<i32>} : memref<8x128xf32, #tpu.memory_space<vmem>>, vector<8x128xf32>,
    } else {
    }
    return
  }
  func.func @transform_0(%arg0: i32) -> (i32, i32) {
    %c0_i32 = arith.constant 0 : i32
    %c0_i32_0 = arith.constant 0 : i32
    return %c0_i32, %arg0 : i32, i32
  }
  func.func @transform_1(%arg0: i32) -> (i32, i32) {
    %c0_i32 = arith.constant 0 : i32
    %c0_i32_0 = arith.constant 0 : i32
    return %arg0, %c0_i32 : i32, i32
  }
  func.func @transform_2(%arg0: i32) -> (i32, i32) {
    %c0_i32 = arith.constant 0 : i32
    %c0_i32_0 = arith.constant 0 : i32
    %c0_i32_1 = arith.constant 0 : i32
    return %c0_i32, %c0_i32_0 : i32, i32
  }
  func.func @transform_3(%arg0: i32) -> (i32, i32) {
    %c0_i32 = arith.constant 0 : i32
    %c0_i32_0 = arith.constant 0 : i32
    %c0_i32_1 = arith.constant 0 : i32
    return %c0_i32, %c0_i32_0 : i32, i32
  }
  func.func @transform_4(%arg0: i32) -> (i32, i32) {
    %c0_i32 = arith.constant 0 : i32
    %c0_i32_0 = arith.constant 0 : i32
    %c0_i32_1 = arith.constant 0 : i32
    return %c0_i32, %c0_i32_0 : i32, i32
  }
  func.func @transform_5(%arg0: i32) -> (i32, i32) {
    %c0_i32 = arith.constant 0 : i32
    %c0_i32_0 = arith.constant 0 : i32
    %c0_i32_1 = arith.constant 0 : i32
    return %c0_i32, %c0_i32_0 : i32, i32
  }
  func.func @transform_6(%arg0: i32) -> (i32, i32) {
    %c0_i32 = arith.constant 0 : i32
    %c0_i32_0 = arith.constant 0 : i32
    %c0_i32_1 = arith.constant 0 : i32
    return %c0_i32, %c0_i32_0 : i32, i32
  }
}

</mosaic_0001>

<bundles_post_ra>
// kernel: tpu_custom_call.1
= control target key start
LH: loop header
LB: loop body
LE: loop exit
PB: predicated region body
PF: predicated region fallthrough
CT: control target
= control target key end

     0   :  { %s1547_s0 = inlined_call_operand.hbm [shape: f32[8,256], index: 0, kind: input, shape index: {}]   ;;  %s1548_s1 = inlined_call_operand.hbm [shape: bf16[256,256], index: 1, kind: input, shape index: {}]   ;;  %s1549_s2 = inlined_call_operand.hbm [shape: f32[1,256], index: 2, kind: input, shape index: {}]   ;;  %s1550_s3 = inlined_call_operand.vmem [shape: f32[1,256], index: 3, kind: input, shape index: {}]   ;;  %s1551_s4 = inlined_call_operand.hbm [shape: bf16[256,128], index: 4, kind: input, shape index: {}]   ;;  %s1552_s5 = inlined_call_operand.vmem [shape: f32[1,128], index: 5, kind: input, shape index: {}]   ;;  %s1553_s6 = inlined_call_operand.hbm [shape: f32[8,128], index: 6, kind: output, shape index: {}]  }
   0x1   :  { %1554 = sst [smem:[#allocation17_spill]] %s1549_s2 }
   0x2   :  { %11 = vsyncpa [#allocation4], 0 }
   0x3   :  { %13 = vsyncpa [#allocation4 + $0x1], 0 }
   0x4   :  { %14 = vsyncpa [#allocation7], 0 }
   0x5   :  { %16 = vsyncpa [#allocation7 + $0x1], 0 }
   0x6   :  { %17 = vsyncpa [#allocation10], 0 }
   0x7   :  { %18 = vsyncpa [#allocation5], 0  ;;  %s1342_s21 = smov 0   ;;  %s1344_s22 = smov 0  }
   0x8   :  { %s1346_s23 = smov 0   ;;  %s1348_s24 = smov 0  }
   0x9 LB: > { %s1361_s25 = sadd.s32 4294967295, %s1296_s24   ;;  %p44_p0 = scmp.ne.s32.totalorder %s1288_s22, %s1284_s21  ;;  %s1296_s24 = sphi %s1348_s24, %s1562_s24   ;;  %s1292_s23 = sphi %s1346_s23, %s1561_s23   ;;  %s1288_s22 = sphi %s1344_s22, %s1560_s22   ;;  %s1284_s21 = sphi %s1342_s21, %s1559_s21  }
   0xa   : > { %p45_p1 = scmp.eq.s32.totalorder %s1361_s25, 0  ;;  %p831_p2 = scmp.ge.s32.totalorder %s1296_s24, 1 }
   0xb   : > { %p186_p3 = scmp.lt.s32.totalorder %s1296_s24, 3  ;;  %p832_p4 = scmp.ne.s32.totalorder %s1361_s25, 0 }
   0xc   : > { %p1370_p5 = por %p45_p1, %p44_p0  ;;  %s1556_s2 = sld [smem:[#allocation17_spill]] }
   0xd   : > { %p1377_p6 = pnand %p831_p2, %p186_p3  ;;  %s1298_s7 = smov [#allocation8]  }
   0xe   : > { %s200_s8 = sshll.u32 %s1298_s7, 4  ;;  %s212_s11 = sshll.u32 %s1551_s4, 4  ;;  %s201_s8 = int_to_ptr.vmem [resolvable:$true] %s200_s8  ;;  %s213_s11 = int_to_ptr.hbm [resolvable:$true] %s212_s11 }
   0xf   : > { %p1031_p7 = pneg %p1377_p6  ;;  %s1299_s12 = smov [#allocation9]  }
  0x10   : > { %s214_s13 = sshll.u32 %s1299_s12, 4  ;;  %s1300_s14 = smov 64   ;;  %s215_s13 = int_to_ptr.vmem [resolvable:$true] %s214_s13 }
  0x11   : > { %p1032_p8 = pnand %p1031_p7, %p45_p1  ;;  %s1301_s15 = smov 4  }
  0x12   : > { %s198_s29 = sshll.u32 %s1556_s2, 4  ;;  %s1389_s16 = sadd.s32 1, %s1296_s24   ;;  %s199_s29 = int_to_ptr.hbm [resolvable:$true] %s198_s29 }
  0x13   : > { %1034 = dma.hbm_to_vmem [thread:$0]  (!%p1032_p8), %s199_s29, 32, %s201_s8, [#allocation7]  }
  0x14   : > { %1037 = dma.hbm_to_vmem [thread:$0]  (!%p1032_p8), %s213_s11, 2048, %s215_s13, [#allocation10], %s1300_s14, %s1300_s14, %s1301_s15  }
  0x15   : > { %s28_s17 = ssub.s32 %s1296_s24, %s1389_s16  ;;  %s31_s18 = sadd.s32 1, %s1292_s23 }
  0x16   : > { %p29_p9 = scmp.eq.s32.totalorder %s28_s17, 0  ;;  %p38_p10 = scmp.ne.s32.totalorder %s1292_s23, %s1288_s22 }
  0x17   : > { %p39_p11 = scmp.eq.s32.totalorder %s1296_s24, 0  ;;  %p1047_p13 = scmp.lt.s32.totalorder %s1296_s24, 2 }
  0x18   : > { %s1398_s19 = scalar_select %p29_p9, %s1292_s23, %s31_s18  }
  0x19   : > { %p40_p12 = por %p39_p11, %p38_p10  ;;  %s1402_s20 = sand.u32 1, %s1292_s23  }
  0x1a   : > { %s836_s21 = sshll.u32 %s1296_s24, 3  ;;  %s835_s27 = sshll.u32 %s1402_s20, 3 }
  0x1b   : > { %s239_s7 = scalar_lea.hbm %s1547_s0, %s836_s21  ;;  %s235_s9 = scalar_lea.vmem [#allocation3], %s835_s27 }
  0x1c   : > { %s241_s8 = sshll.u32 %s239_s7, 4  ;;  %s243_s10 = sshll.u32 %s235_s9, 4  ;;  %s242_s8 = int_to_ptr.hbm [resolvable:$true] %s241_s8  ;;  %s244_s10 = int_to_ptr.vmem [resolvable:$true] %s243_s10 }
  0x1d   : > { %p1409_p0 = pnand %p1047_p13, %p40_p12  ;;  %s837_s12 = sshll.u32 %s1402_s20, 7 }
  0x1e   : > { %s250_s13 = sand.u32 1, %s1296_s24   ;;  %s254_s14 = scalar_lea.vmem [#allocation6], %s837_s12 }
  0x1f   : > { %s263_s15 = sshll.u32 %s254_s14, 4  ;;  %s232_s17 = scalar_lea.sflag [#allocation4], %s1402_s20  ;;  %s264_s15 = int_to_ptr.vmem [resolvable:$true] %s263_s15 }
  0x20   : > { %s1158_s18 = sshra.s32 %s242_s8, 4  ;;  %p1162_p3 = pneg %p1409_p0  ;;  %s1159_s18 = int_to_ptr.hbm [resolvable:$true] %s1158_s18 }
  0x21   : > { %s1160_s28 = scalar_lea.hbm %s1159_s18, 8  ;;  %s1165_s29 = scalar_lea.hbm %s1547_s0, 16 }
  0x22   : > { %p1161_p2 = scmp.ne.s32.totalorder %s1159_s18, %s1160_s28  ;;  %p1166_p9 = scmp.lt.s32.totalorder %s1159_s18, %s1547_s0 }
  0x23   : > { %p1167_p10 = scmp.lt.s32.totalorder %s1165_s29, %s1160_s28 }
  0x24   : > { %p1163_p7 = pnand %p1162_p3, %p1161_p2 }
  0x25   : > { %p1168_p11 = por %p1167_p10, %p1166_p9 }
  0x26   : > { %p1164_p8 = pneg %p1163_p7 }
  0x28   : > { %p1169_p12 = pnand %p1168_p11, %p1164_p8 }
  0x2a   : > { %1172 = shalt.err (!%p1169_p12)
}
  0x2b   : > { %1041 = dma.hbm_to_vmem [thread:$0]  (!%p1409_p0), %s242_s8, 128, %s244_s10, %s232_s17  }
  0x2c   : > { %s982_s20 = sshll.u32 %s1296_s24, 7  ;;  %s251_s2 = scalar_lea.sflag [#allocation7], %s250_s13 }
  0x2d   : > { %s260_s21 = scalar_lea.hbm %s1548_s1, %s982_s20  ;;  %s1195_s8 = scalar_lea.hbm %s1548_s1, 256 }
  0x2e   : > { %s261_s27 = sshll.u32 %s260_s21, 4  ;;  %s262_s27 = int_to_ptr.hbm [resolvable:$true] %s261_s27 }
  0x2f   : > { %s1188_s7 = sshra.s32 %s262_s27, 4  ;;  %s1189_s7 = int_to_ptr.hbm [resolvable:$true] %s1188_s7 }
  0x30   : > { %s1190_s18 = scalar_lea.hbm %s1189_s7, 128  ;;  %p1196_p8 = scmp.lt.s32.totalorder %s1189_s7, %s1548_s1 }
  0x31   : > { %p1191_p13 = scmp.ne.s32.totalorder %s1189_s7, %s1190_s18  ;;  %p1197_p9 = scmp.lt.s32.totalorder %s1195_s8, %s1190_s18 }
  0x33   : > { %p1193_p2 = pnand %p1191_p13, %p1162_p3  ;;  %p1198_p10 = por %p1197_p9, %p1196_p8 }
  0x35   : > { %p1194_p7 = pneg %p1193_p2 }
  0x37   : > { %p1199_p11 = pnand %p1198_p10, %p1194_p7 }
  0x39   : > { %1202 = shalt.err (!%p1199_p11)
}
  0x3a   : > { %s1302_s13 = smov 128   ;;  %s1303_s17 = smov 8  }
  0x3b   : > { %1044 = dma.hbm_to_vmem [thread:$0]  (!%p1409_p0), %s262_s27, 2048, %s264_s15, %s251_s2, %s1302_s13, %s1302_s13, %s1303_s17  }
  0x3c   : > { %275 = sbr.rel (%p1377_p6) target bundleno = 469 (0x1d5), region = 44  ;;  %s277_s9 = sand.u32 (!%p1377_p6), 1, %s1288_s22  }
  0x3d   : > { %s842_s20 = sshll.u32 (!%p1377_p6), %s277_s9, 3  ;;  %s278_s12 = scalar_lea.sflag (!%p1377_p6), [#allocation4], %s277_s9 }
  0x3e   : > { %s1447_s14 = scalar_lea.vmem (!%p1377_p6), [#allocation3], %s842_s20 }
  0x41   : > { %1263 = dma.done.wait (%p1370_p5), %s278_s12, 128  }
  0x42   : > { %1265 = vsyncadd (%p1370_p5), %s278_s12, 4294967168  ;;  %s287_s21 = sand.u32 1, %s1361_s25   ;;  %s843_s11 = sshll.u32 %s277_s9, 7 }
  0x43   : > { %s288_s2 = scalar_lea.sflag [#allocation7], %s287_s21  ;;  %s1454_s15 = scalar_lea.vmem [#allocation6], %s843_s11 }
  0x44   : > { %1267 = dma.done.wait (%p1370_p5), %s288_s2, 2048  }
  0x45   : > { %1269 = vsyncadd (%p1370_p5), %s288_s2, 4294965248 }
  0x46   : > { %1271 = dma.done.wait (%p45_p1), [#allocation7], 32  }
  0x47   : > { %1273 = vsyncadd (%p45_p1), [#allocation7], 4294967264 }
  0x48   : > { %1275 = dma.done.wait (%p45_p1), [#allocation10], 2048  }
  0x49   : > { %1277 = vsyncadd (%p45_p1), [#allocation10], 4294965248  ;;  %335 = sbr.rel (%p832_p4) target bundleno = 81 (0x51), region = 64 }
  0x4e   : > { %v1304_v0 = vmov 0.0  }
  0x4f   : > { %336 = vst [vmem:[#allocation2] sm:$0xff] %v1304_v0 }
  0x50   : > { %337 = vst [vmem:[#allocation2 + $0x8] sm:$0xff] %v1304_v0 }
  0x51 PF: > { %v905_v1 = vld [vmem:[%s1454_s15 + $0x70] sm:$0xf]  ;;  %v998_v2 = vld [vmem:[%s1454_s15 + $0x74] sm:$0xf0]  ;;  %v997_v3 = vld [vmem:[%s1454_s15 + $0x74] sm:$0xf] }
  0x52   : > { %v906_v4 = vor.u32 %v998_v2, %v905_v1  ;;  %v907_v5 = vld [vmem:[%s1454_s15 + $0x78] sm:$0xf0]  ;;  %v897_v6 = vld [vmem:[%s1454_s15 + $0x60] sm:$0xf]  ;;  %v996_v7 = vld [vmem:[%s1454_s15 + $0x64] sm:$0xf0] }
  0x53   : > { %v910_v8 = vor.u32 %v997_v3, %v907_v5  ;;  %v995_v9 = vld [vmem:[%s1454_s15 + $0x64] sm:$0xf]  ;;  %v899_v10 = vld [vmem:[%s1454_s15 + $0x68] sm:$0xf0]  ;;  %v898_v11 = vor.u32 %v996_v7, %v897_v6  ;;  %v889_v13 = vld [vmem:[%s1454_s15 + $0x50] sm:$0xf] }
  0x54   : > { %438 = vmatpush.bf16.msra.mxu0 %v906_v4  ;;  %v902_v12 = vor.u32 %v995_v9, %v899_v10  ;;  %v994_v14 = vld [vmem:[%s1454_s15 + $0x54] sm:$0xf0]  ;;  %v993_v15 = vld [vmem:[%s1454_s15 + $0x54] sm:$0xf]  ;;  %v891_v16 = vld [vmem:[%s1454_s15 + $0x58] sm:$0xf0] }
  0x55   : > { %451 = vmatpush.bf16.msra.mxu1 %v910_v8  ;;  %v890_v17 = vor.u32 %v994_v14, %v889_v13  ;;  %v894_v18 = vor.u32 %v993_v15, %v891_v16  ;;  %v881_v19 = vld [vmem:[%s1454_s15 + $0x40] sm:$0xf]  ;;  %v992_v20 = vld [vmem:[%s1454_s15 + $0x44] sm:$0xf0]  ;;  %v991_v21 = vld [vmem:[%s1454_s15 + $0x44] sm:$0xf] }
  0x56   : > { %v883_v22 = vld [vmem:[%s1454_s15 + $0x48] sm:$0xf0]  ;;  %v882_v23 = vor.u32 %v992_v20, %v881_v19  ;;  %v873_v25 = vld [vmem:[%s1454_s15 + $0x30] sm:$0xf]  ;;  %v990_v26 = vld [vmem:[%s1454_s15 + $0x34] sm:$0xf0] }
  0x57   : > { %v886_v24 = vor.u32 %v991_v21, %v883_v22  ;;  %v989_v27 = vld [vmem:[%s1454_s15 + $0x34] sm:$0xf]  ;;  %v875_v28 = vld [vmem:[%s1454_s15 + $0x38] sm:$0xf0]  ;;  %v874_v29 = vor.u32 %v990_v26, %v873_v25  ;;  %v865_v31 = vld [vmem:[%s1454_s15 + $0x20] sm:$0xf] }
  0x58   : > { %439 = vmatpush.bf16.msra.mxu0 %v898_v11  ;;  %v878_v30 = vor.u32 %v989_v27, %v875_v28  ;;  %v988_v32 = vld [vmem:[%s1454_s15 + $0x24] sm:$0xf0]  ;;  %v987_v33 = vld [vmem:[%s1454_s15 + $0x24] sm:$0xf]  ;;  %v867_v34 = vld [vmem:[%s1454_s15 + $0x28] sm:$0xf0] }
  0x59   : > { %452 = vmatpush.bf16.msra.mxu1 %v902_v12  ;;  %v866_v35 = vor.u32 %v988_v32, %v865_v31  ;;  %v870_v36 = vor.u32 %v987_v33, %v867_v34  ;;  %v857_v37 = vld [vmem:[%s1454_s15 + $0x10] sm:$0xf]  ;;  %v986_v38 = vld [vmem:[%s1454_s15 + $0x14] sm:$0xf0]  ;;  %v985_v39 = vld [vmem:[%s1454_s15 + $0x14] sm:$0xf] }
  0x5a   : > { %v859_v40 = vld [vmem:[%s1454_s15 + $0x18] sm:$0xf0]  ;;  %v858_v41 = vor.u32 %v986_v38, %v857_v37  ;;  %v849_v43 = vld [vmem:[%s1454_s15] sm:$0xf]  ;;  %v984_v44 = vld [vmem:[%s1454_s15 + $0x4] sm:$0xf0] }
  0x5b   : > { %v862_v42 = vor.u32 %v985_v39, %v859_v40  ;;  %v983_v45 = vld [vmem:[%s1454_s15 + $0x4] sm:$0xf]  ;;  %v851_v46 = vld [vmem:[%s1454_s15 + $0x8] sm:$0xf0]  ;;  %v850_v47 = vor.u32 %v984_v44, %v849_v43  ;;  %v340_v48 = vld [vmem:[%s1447_s14] sm:$0xff]  ;;  %p911_p1 = scmp.ne.s32.totalorder %s1361_s25, 1 }
  0x5c   : > { %440 = vmatpush.bf16.msra.mxu0 %v890_v17  ;;  %v854_v49 = vor.u32 %v983_v45, %v851_v46  ;;  %v341_v50 = vpack.c.bf16 %v340_v48, %v340_v48  ;;  %v338_v51 = vld [vmem:[#allocation2] sm:$0xff]  ;;  %v339_v52 = vld [vmem:[#allocation2 + $0x8] sm:$0xff] }
  0x5d   : > { %453 = vmatpush.bf16.msra.mxu1 %v894_v18 }
  0x60   : > { %441 = vmatpush.bf16.msra.mxu0 %v882_v23 }
  0x61   : > { %454 = vmatpush.bf16.msra.mxu1 %v886_v24 }
  0x64   : > { %442 = vmatpush.bf16.msra.mxu0 %v874_v29 }
  0x65   : > { %455 = vmatpush.bf16.msra.mxu1 %v878_v30 }
  0x68   : > { %443 = vmatpush.bf16.msra.mxu0 %v866_v35 }
  0x69   : > { %456 = vmatpush.bf16.msra.mxu1 %v870_v36 }
  0x6c   : > { %444 = vmatpush.bf16.msra.mxu0 %v858_v41 }
  0x6d   : > { %457 = vmatpush.bf16.msra.mxu1 %v862_v42 }
  0x70   : > { %445 = vmatpush.bf16.msra.mxu0 %v850_v47 }
  0x71   : > { %458 = vmatpush.bf16.msra.mxu1 %v854_v49 }
  0x73   : > { %446 = vmatmul.bf16.vlgmr.msra.gmra.mxu0 %v341_v50 }
  0x74   : > { %459 = vmatmul.bf16.vlgmr.msra.gmra.mxu1 %v341_v50 }
  0xf0   : > { %v447_v53 = vpop.f32.mrf.mxu0 }
  0xf1   : > { %v464_v54 = vadd.f32 %v447_v53, %v338_v51  ;;  %v460_v55 = vpop.f32.mrf.mxu1 }
  0xf2   : > { %v465_v56 = vadd.f32 %v460_v55, %v339_v52 }
  0xf3   : > { %466 = vst [vmem:[#allocation2] sm:$0xff] %v464_v54 }
  0xf4   : > { %467 = vst [vmem:[#allocation2 + $0x8] sm:$0xff] %v465_v56 }
  0xf5   : > { %471 = sbr.rel (%p911_p1) target bundleno = 464 (0x1d0), region = 68 }
  0xf8   : > { %v449_v57 = vpop.f32.mrf.mxu0 }
  0xf9   : > { %v462_v58 = vpop.f32.mrf.mxu1 }
  0xfa   : > { %v1006_v59 = vld [vmem:[#allocation9 + $0x38] sm:$0xff]  ;;  %v1005_v61 = vld [vmem:[#allocation9 + $0x30] sm:$0xff]  ;;  %v1004_v1 = vld [vmem:[#allocation9 + $0x28] sm:$0xff]  ;;  %v488_v7 = vlaneseq  ;;  %v1305_v25 = vmov 0.0   ;;  %vm539_vm7 = vcmask 1040384  }
  0xfb   : > { %v1014_v60 = vld [vmem:[#allocation9 + $0x78] sm:$0xff]  ;;  %702 = vmatpush.bf16.msra.mxu0 %v1006_v59  ;;  %v1013_v62 = vld [vmem:[#allocation9 + $0x70] sm:$0xff]  ;;  %v1506_v0 = vld [vmem:[#allocation2 + $0x8] sm:$0xff] }
  0xfc   : > { %715 = vmatpush.bf16.msra.mxu1 %v1014_v60  ;;  %v1504_v63 = vld [vmem:[#allocation2] sm:$0xff]  ;;  %v1012_v2 = vld [vmem:[#allocation9 + $0x68] sm:$0xff]  ;;  %v480_v4 = vrot.slane %v1506_v0, 4  ;;  %v489_v14 = vshrl.u32 %v488_v7, 7  ;;  %v1001_v21 = vld [vmem:[#allocation9 + $0x10] sm:$0xff] }
  0xfd   : > { %v474_v3 = vrot.slane %v1504_v63, 4  ;;  %v1003_v8 = vld [vmem:[#allocation9 + $0x20] sm:$0xff]  ;;  %v1002_v15 = vld [vmem:[#allocation9 + $0x18] sm:$0xff]  ;;  %v1009_v22 = vld [vmem:[#allocation9 + $0x50] sm:$0xff] }
  0xfe   : > { %v481_v6 = vadd.f32 %v480_v4, %v1506_v0  ;;  %v1011_v9 = vld [vmem:[#allocation9 + $0x60] sm:$0xff]  ;;  %v1010_v16 = vld [vmem:[#allocation9 + $0x58] sm:$0xff]  ;;  %vm490_vm0 = vcmp.lt.s32.totalorder %v489_v14, 2  ;;  %v1000_v29 = vld [vmem:[#allocation9 + $0x8] sm:$0xff] }
  0xff   : > { %703 = vmatpush.bf16.msra.mxu0 %v1005_v61  ;;  %v475_v5 = vadd.f32 %v474_v3, %v1504_v63  ;;  %v912_v26 = vsel %vm490_vm0, 1.0, %v1305_v25  ;;  %v1008_v30 = vld [vmem:[#allocation9 + $0x48] sm:$0xff]  ;;  %v999_v35 = vld [vmem:[#allocation9] sm:$0xff] }
 0x100   : > { %716 = vmatpush.bf16.msra.mxu1 %v1013_v62  ;;  %v482_v11 = vrot.slane %v481_v6, 2  ;;  %v1007_v36 = vld [vmem:[#allocation9 + $0x40] sm:$0xff] }
 0x101   : > { %v476_v10 = vrot.slane %v475_v5, 2 }
 0x102   : > { %v483_v13 = vadd.f32 %v482_v11, %v481_v6 }
 0x103   : > { %704 = vmatpush.bf16.msra.mxu0 %v1004_v1  ;;  %v477_v12 = vadd.f32 %v476_v10, %v475_v5  ;;  %v535_v5 = vld [vmem:[#allocation8] sm:$0x3] }
 0x104   : > { %717 = vmatpush.bf16.msra.mxu1 %v1012_v2  ;;  %v484_v18 = vrot.slane %v483_v13, 1 }
 0x105   : > { %v478_v17 = vrot.slane %v477_v12, 1 }
 0x106   : > { %v485_v20 = vadd.f32 %v484_v18, %v483_v13  ;;  %v543_v13 = vld [vmem:[%s1550_s3] sm:$0x3] }
 0x107   : > { %705 = vmatpush.bf16.msra.mxu0 %v1003_v8  ;;  %v479_v19 = vadd.f32 %v478_v17, %v477_v12 }
 0x108   : > { %718 = vmatpush.bf16.msra.mxu1 %v1011_v9  ;;  %v1514_v24 = vmul.f32 0.5, %v485_v20 }
 0x109   : > { %v1512_v23 = vmul.f32 0.5, %v479_v19 }
 0x10a   : > { %v494_v28 = vsub.f32 %v1506_v0, %v1514_v24 }
 0x10b   : > { %706 = vmatpush.bf16.msra.mxu0 %v1002_v15  ;;  %v493_v27 = vsub.f32 %v1504_v63, %v1512_v23 }
 0x10c   : > { %719 = vmatpush.bf16.msra.mxu1 %v1010_v16  ;;  %v496_v32 = vmul.f32 %v912_v26, %v494_v28 }
 0x10d   : > { %v495_v31 = vmul.f32 %v912_v26, %v493_v27 }
 0x10e   : > { %v498_v34 = vmul.f32 %v496_v32, %v496_v32 }
 0x10f   : > { %707 = vmatpush.bf16.msra.mxu0 %v1001_v21  ;;  %v497_v33 = vmul.f32 %v495_v31, %v495_v31 }
 0x110   : > { %720 = vmatpush.bf16.msra.mxu1 %v1009_v22  ;;  %v505_v38 = vrot.slane %v498_v34, 4 }
 0x111   : > { %v499_v37 = vrot.slane %v497_v33, 4 }
 0x112   : > { %v506_v40 = vadd.f32 %v505_v38, %v498_v34 }
 0x113   : > { %708 = vmatpush.bf16.msra.mxu0 %v1000_v29  ;;  %v500_v39 = vadd.f32 %v499_v37, %v497_v33 }
 0x114   : > { %721 = vmatpush.bf16.msra.mxu1 %v1008_v30  ;;  %v507_v42 = vrot.slane %v506_v40, 2 }
 0x115   : > { %v501_v41 = vrot.slane %v500_v39, 2 }
 0x116   : > { %v508_v44 = vadd.f32 %v507_v42, %v506_v40 }
 0x117   : > { %709 = vmatpush.bf16.msra.mxu0 %v999_v35  ;;  %v502_v43 = vadd.f32 %v501_v41, %v500_v39 }
 0x118   : > { %722 = vmatpush.bf16.msra.mxu1 %v1007_v36  ;;  %v509_v46 = vrot.slane %v508_v44, 1 }
 0x119   : > { %v503_v45 = vrot.slane %v502_v43, 1 }
 0x11a   : > { %v510_v48 = vadd.f32 %v509_v46, %v508_v44 }
 0x11b   : > { %v504_v47 = vadd.f32 %v503_v45, %v502_v43 }
 0x11c   : > { %v512_v50 = vmul.f32 0.5, %v510_v48 }
 0x11d   : > { %v511_v49 = vmul.f32 0.5, %v504_v47 }
 0x11e   : > { %v514_v52 = vadd.f32 1e-05, %v512_v50 }
 0x11f   : > { %v513_v51 = vadd.f32 1e-05, %v511_v49 }
 0x120   : > { %vm531_vm3 = vweird.f32 %v514_v52 }
 0x121   : > { %1094 = vrsqrt.f32 %v513_v51  ;;  %vm521_vm1 = vweird.f32 %v513_v51 }
 0x122   : > { %1096 = vrsqrt.f32 %v514_v52 }
 0x127   : > { %v1095_v53 = vpop.eup %1094 }
 0x128   : > { %v1097_v54 = vpop.eup %1096  ;;  %v516_v55 = vmul.f32 %v1095_v53, %v513_v51  ;;  %vm522_vm2 = vweird.f32 %v1095_v53 }
 0x129   : > { %v526_v56 = vmul.f32 %v1097_v54, %v514_v52  ;;  %vm532_vm4 = vweird.f32 %v1097_v54  ;;  %vm523_vm5 = vmor %vm521_vm1, %vm522_vm2 }
 0x12a   : > { %v517_v57 = vmul.f32 %v1095_v53, %v516_v55  ;;  %vm533_vm6 = vmor %vm531_vm3, %vm532_vm4 }
 0x12b   : > { %v527_v58 = vmul.f32 %v1097_v54, %v526_v56 }
 0x12c   : > { %v518_v59 = vmul.f32 0.5, %v517_v57 }
 0x12d   : > { %v528_v60 = vmul.f32 0.5, %v527_v58 }
 0x12e   : > { %v519_v61 = vsub.f32 1.5, %v518_v59 }
 0x12f   : > { %v529_v62 = vsub.f32 1.5, %v528_v60 }
 0x130   : > { %v520_v1 = vmul.f32 %v1095_v53, %v519_v61 }
 0x131   : > { %v530_v2 = vmul.f32 %v1097_v54, %v529_v62 }
 0x132   : > { %v524_v3 = vsel %vm523_vm5, %v1095_v53, %v520_v1 }
 0x133   : > { %v534_v4 = vsel %vm533_vm6, %v1097_v54, %v530_v2 }
 0x134   : > { %v538_v6 = vrot.slane %v534_v4, 7 }
 0x136   : > { %v540_v7 = vsel %vm539_vm7, %v524_v3, %v538_v6 }
 0x137   : > { %v542_v8 = vmul.f32 %v540_v7, %v535_v5 }
 0x139   : > { %v545_v9 = vperm.slane %v542_v8, 0  ;;  %v546_v10 = vperm.slane %v542_v8, 1 }
 0x13b   : > { %v549_v11 = vmul.f32 %v545_v9, %v1512_v23  ;;  %v550_v12 = vmul.f32 %v546_v10, %v1514_v24  ;;  %v557_v17 = vmul.f32 %v545_v9, %v1504_v63  ;;  %v558_v18 = vmul.f32 %v546_v10, %v1506_v0  ;;  %v1093_v24 = vld [vmem:[%s1552_s5] ss:$0 sm:$0xff] }
 0x13d   : > { %v553_v14 = vrot.slane %v550_v12, 7 }
 0x13f   : > { %v554_v15 = vsel %vm539_vm7, %v549_v11, %v553_v14 }
 0x140   : > { %v556_v16 = vsub.f32 %v543_v13, %v554_v15 }
 0x142   : > { %v560_v19 = vperm.slane %v556_v16, 0  ;;  %v561_v20 = vperm.slane %v556_v16, 1 }
 0x144   : > { %v564_v21 = vadd.f32 %v560_v19, %v557_v17  ;;  %v565_v22 = vadd.f32 %v561_v20, %v558_v18 }
 0x146   : > { %v566_v25 = vmax.f32 %v564_v21, 0.0  ;;  %v567_v26 = vmax.f32 %v565_v22, 0.0 }
 0x148   : > { %v568_v23 = vpack.c.bf16 %v566_v25, %v566_v25  ;;  %v569_v27 = vpack.c.bf16 %v567_v26, %v567_v26 }
 0x14a   : > { %710 = vmatmul.bf16.vlgmr.msra.gmra.mxu0 %v568_v23  ;;  %723 = vmatmul.bf16.vlgmr.msra.gmra.mxu1 %v569_v27 }
 0x1c7   : > { %v711_v28 = vpop.f32.mrf.mxu0  ;;  %v724_v29 = vpop.f32.mrf.mxu1 }
 0x1c8   : > { %v712_v30 = vadd.f32 %v1093_v24, %v711_v28 }
 0x1ca   : > { %v725_v63 = vadd.f32 %v724_v29, %v712_v30 }
 0x1cc   : > { %728 = vst [vmem:[#allocation11] sm:$0xff] %v725_v63 }
 0x1cf   : > { %v713_v0 = vpop.f32.mrf.mxu0  ;;  %v726_v31 = vpop.f32.mrf.mxu1 }
 0x1d0 PF: > { %p1050_p4 = scmp.eq.s32.totalorder %s1361_s25, 1  ;;  %s1306_s18 = smov [#allocation11]  }
 0x1d1   : > { %s735_s28 = sshll.u32 %s1306_s18, 4  ;;  %s737_s24 = sshll.u32 %s1553_s6, 4  ;;  %s736_s28 = int_to_ptr.vmem [resolvable:$true] %s735_s28  ;;  %s738_s24 = int_to_ptr.hbm [resolvable:$true] %s737_s24 }
 0x1d2   : > { %1028 = dma.vmem_to_hbm [thread:$0]  (%p1050_p4), %s736_s28, 128, %s738_s24, [#allocation5]  }
 0x1d3   : > { %1279 = dma.done.wait (%p1050_p4), [#allocation5], 128  }
 0x1d4   : > { %1281 = vsyncadd (%p1050_p4), [#allocation5], 4294967168 }
 0x1d5 PF: > { %p21_p5 = scmp.ge.s32.totalorder %s1389_s16, 4   ;;  %s1559_s21 = smov %s1288_s22 }
 0x1d6   : > { %s1560_s22 = smov %s1292_s23  ;;  %s1561_s23 = smov %s1398_s19 }
 0x1d7   : > { %s1562_s24 = smov %s1389_s16  ;;  %23 = sbr.rel (!%p21_p5) target bundleno = 9 (0x9), region = 110 }
 0x1dc   :  { %751 = vsyncpa [#allocation4], 1 }
 0x1dd   :  { %753 = vsyncpa [#allocation4 + $0x1], 1 }
 0x1de   :  { %754 = vsyncpa [#allocation7], 1 }
 0x1df   :  { %756 = vsyncpa [#allocation7 + $0x1], 1 }
 0x1e0   :  { %757 = vsyncpa [#allocation10], 1 }
 0x1e1   :  { %758 = vsyncpa [#allocation5], 1 }
 0x1e2   :  { %760 = vsyncpa [#allocation5 + $0x1], 1 }

</bundles_post_ra>
